<compile_context>
chip_gen: v5e
topology: v5e:2x2
jax: 0.10.0
libtpu: 0.0.40
codegen_flags: <defaults>
</compile_context>

<pallas_src>
import math
import functools

import jax
import jax.numpy as jnp
from jax.experimental import pallas as pl
from jax.experimental.pallas import tpu as pltpu

C_GATE = 100.0
LANE = 128
MAX_ROW_BLOCK = 256


def _ceil_to(x, m):
    return ((x + m - 1) // m) * m


# ----------------------------------------------------------------------------
# Fused kernel: one grid step = one (row_block, Kp) slab of inputs -> the
# matching (row_block, Op) slabs of mu / var.  All weights are grid-resident
# (constant index_map) and stored in bf16.
# ----------------------------------------------------------------------------
def _vbp_net_kernel(x_ref, w1mu_ref, w1sig_ref, b1_ref,
                    w2mu_ref, w2var_ref, b2_ref,
                    mu_ref, var_ref):
    x = x_ref[...]                                        # (RB, Kp) f32
    xb = x.astype(jnp.bfloat16)

    # ---- dense1: pre-activation mean / variance (deterministic input) ----
    h1 = jnp.dot(xb, w1mu_ref[...],
                 preferred_element_type=jnp.float32) + b1_ref[...]
    v1 = jnp.dot((x * x).astype(jnp.bfloat16), w1sig_ref[...],
                 preferred_element_type=jnp.float32)

    # ---- gated activation moments (gate on the PRE-activation mean) ----
    p = jax.nn.sigmoid(C_GATE * h1)                       # gate probability
    zh = p * h1                                           # E[f]
    var_f = p * v1 + (p * (1.0 - p)) * (h1 * h1)          # Var[f]  (>= 0)
    ef2 = var_f + zh * zh                                 # E[f^2]

    # ---- dense2: output mean ----
    mu = jnp.dot(zh.astype(jnp.bfloat16), w2mu_ref[...],
                 preferred_element_type=jnp.float32) + b2_ref[...]

    # ---- dense2: output variance, both contributions in one dot ----
    # [ef2 | var_f] (RB, 2*Hp)  @  [sig2^T ; mu_W^2^T] (2*Hp, Op)
    var_in = jnp.concatenate(
        [ef2.astype(jnp.bfloat16), var_f.astype(jnp.bfloat16)], axis=1)
    var = jnp.dot(var_in, w2var_ref[...], preferred_element_type=jnp.float32)

    mu_ref[...] = mu
    var_ref[...] = var


# ----------------------------------------------------------------------------
# Wrapper around pallas_call.
# ----------------------------------------------------------------------------
def vbp_net_forward(x, params):
    N, F = x.shape
    w1mu_t = params["w1mu_t"]          # (Kp, Hp)    bf16
    w1sig_t = params["w1sig_t"]        # (Kp, Hp)    bf16
    b1 = params["b1"]                  # (1, Hp)     f32
    w2mu_t = params["w2mu_t"]          # (Hp, Op)    bf16
    w2var_t = params["w2var_t"]        # (2*Hp, Op)  bf16  [sig2^T ; mu_W^2^T]
    b2 = params["b2"]                  # (1, Op)     f32
    Kp, Hp = w1mu_t.shape
    Op = w2mu_t.shape[1]
    n_out = params["n_out"]

    # Row tiling: pad only to a multiple of 8 at small batch (sublane rule);
    # cap the block so large batches get a multi-step parallel grid.
    rb = min(_ceil_to(N, 8), MAX_ROW_BLOCK)
    Np = _ceil_to(N, rb)

    # Zero-pad rows and feature columns (zeros contribute nothing).
    xp = jnp.zeros((Np, Kp), jnp.float32).at[:N, :F].set(x.astype(jnp.float32))

    row_spec = pl.BlockSpec((rb, Kp), lambda i: (i, 0))
    w1_spec = pl.BlockSpec((Kp, Hp), lambda i: (0, 0))
    b1_spec = pl.BlockSpec((1, Hp), lambda i: (0, 0))
    w2mu_spec = pl.BlockSpec((Hp, Op), lambda i: (0, 0))
    w2var_spec = pl.BlockSpec((2 * Hp, Op), lambda i: (0, 0))
    b2_spec = pl.BlockSpec((1, Op), lambda i: (0, 0))
    out_spec = pl.BlockSpec((rb, Op), lambda i: (i, 0))

    mu, var = pl.pallas_call(
        _vbp_net_kernel,
        grid=(Np // rb,),
        in_specs=[row_spec, w1_spec, w1_spec, b1_spec,
                  w2mu_spec, w2var_spec, b2_spec],
        out_specs=(out_spec, out_spec),
        out_shape=(jax.ShapeDtypeStruct((Np, Op), jnp.float32),
                   jax.ShapeDtypeStruct((Np, Op), jnp.float32)),
        compiler_params=pltpu.CompilerParams(
            dimension_semantics=("parallel",)),
    )(xp, w1mu_t, w1sig_t, b1, w2mu_t, w2var_t, b2)

    return mu[:N, :n_out], var[:N, :n_out]


# ----------------------------------------------------------------------------
# Parameter init (deterministic; mirrors VBPLinear.reset_parameters()).
# Weights are pre-transposed to (K, Nout), zero-padded to lane-dense shapes,
# and stored in bf16; mu_W^2 is hoisted here and fused with sig2^T into the
# single variance-path weight slab.
# ----------------------------------------------------------------------------
def _pad_t(w, rows, cols, dtype):
    wt = jnp.transpose(w)                       # (in, out)
    out = jnp.zeros((rows, cols), dtype)
    return out.at[:wt.shape[0], :wt.shape[1]].set(wt.astype(dtype))


def init_params(key, n_features, n_hidden=50, n_out=1):
    Kp = _ceil_to(n_features, LANE)
    Hp = _ceil_to(n_hidden, LANE)
    Op = _ceil_to(n_out, LANE)
    k1m, k1s, k2m, k2s = jax.random.split(key, 4)

    mu1 = (jax.random.normal(k1m, (n_hidden, n_features), jnp.float32)
           / math.sqrt(n_features))
    sig1 = jnp.exp(-9.0 + 0.001 * jax.random.normal(
        k1s, (n_hidden, n_features), jnp.float32))
    mu2 = (jax.random.normal(k2m, (n_out, n_hidden), jnp.float32)
           / math.sqrt(n_hidden))
    sig2 = jnp.exp(-9.0 + 0.001 * jax.random.normal(
        k2s, (n_out, n_hidden), jnp.float32))
    b1 = jnp.zeros((n_hidden,), jnp.float32)
    b2 = jnp.zeros((n_out,), jnp.float32)

    w2sig_t = _pad_t(sig2, Hp, Op, jnp.bfloat16)
    w2mu2_t = (_pad_t(mu2, Hp, Op, jnp.float32) ** 2).astype(jnp.bfloat16)

    return dict(
        # unpadded f32 copies, for the plain-JAX reference check only
        ref=dict(mu1=mu1, sig1=sig1, b1=b1, mu2=mu2, sig2=sig2, b2=b2),
        # kernel-side tensors
        w1mu_t=_pad_t(mu1, Kp, Hp, jnp.bfloat16),
        w1sig_t=_pad_t(sig1, Kp, Hp, jnp.bfloat16),
        b1=jnp.zeros((1, Hp), jnp.float32).at[0, :n_hidden].set(b1),
        w2mu_t=_pad_t(mu2, Hp, Op, jnp.bfloat16),
        w2var_t=jnp.concatenate([w2sig_t, w2mu2_t], axis=0),   # (2*Hp, Op)
        b2=jnp.zeros((1, Op), jnp.float32).at[0, :n_out].set(b2),
        n_out=n_out,
    )


# ----------------------------------------------------------------------------
# Plain-JAX f32 reference of the same forward (for correctness checking).
# ----------------------------------------------------------------------------
def vbp_net_reference(x, ref):
    h1 = x @ ref["mu1"].T + ref["b1"]
    v1 = (x * x) @ ref["sig1"].T
    p = jax.nn.sigmoid(C_GATE * h1)
    zh = p * h1
    var_f = p * v1 + p * (1.0 - p) * h1 * h1
    ef2 = var_f + zh * zh
    mu = zh @ ref["mu2"].T + ref["b2"]
    var = ef2 @ ref["sig2"].T + var_f @ (ref["mu2"] ** 2).T
    return mu, var


if __name__ == "__main__":
    key = jax.random.PRNGKey(0)
    kx, kp = jax.random.split(key)
    N, F = 4, 13                       # small regression batch / feature count
    x = jax.random.normal(kx, (N, F), dtype=jnp.float32)
    params = init_params(kp, n_features=F, n_hidden=50, n_out=1)

    fwd = jax.jit(functools.partial(vbp_net_forward, params=params))
    mu, var = fwd(x)
    jax.block_until_ready((mu, var))

    assert mu.shape == (N, 1), mu.shape
    assert var.shape == (N, 1), var.shape
    assert bool(jnp.all(jnp.isfinite(mu))) and bool(jnp.all(jnp.isfinite(var)))
    assert bool(jnp.all(var >= 0.0))

    # Check the kernel (padded, bf16 matmuls) against the f32 reference.
    mu_ref, var_ref = vbp_net_reference(x, params["ref"])
    assert bool(jnp.allclose(mu, mu_ref, rtol=0.1, atol=1e-2))
    assert bool(jnp.allclose(var, var_ref, rtol=0.1, atol=1e-4))

    print("KERNEL_OK")
</pallas_src>

<mosaic_0001>
module attributes {stable_mosaic.version = 11 : i64} {
  func.func @_vbp_net_kernel(%arg0: i32, %arg1: memref<8x128xf32, #tpu.memory_space<vmem>>, %arg2: memref<128x128xbf16, #tpu.memory_space<vmem>>, %arg3: memref<128x128xbf16, #tpu.memory_space<vmem>>, %arg4: memref<1x128xf32, #tpu.memory_space<vmem>>, %arg5: memref<128x128xbf16, #tpu.memory_space<vmem>>, %arg6: memref<256x128xbf16, #tpu.memory_space<vmem>>, %arg7: memref<1x128xf32, #tpu.memory_space<vmem>>, %arg8: memref<8x128xf32, #tpu.memory_space<vmem>>, %arg9: memref<8x128xf32, #tpu.memory_space<vmem>>) attributes {dimension_semantics = [#tpu.dimension_semantics<parallel>], iteration_bounds = array<i64: 1>, scalar_prefetch = 0 : i64, scratch_operands = 0 : i64, tpu.core_type = #tpu.core_type<tc>, window_params = [{transform_indices = @transform_0, window_bounds = array<i64: 8, 128>}, {pipeline_mode = #tpu.pipeline_mode<synchronous>, transform_indices = @transform_1, window_bounds = array<i64: 128, 128>}, {pipeline_mode = #tpu.pipeline_mode<synchronous>, transform_indices = @transform_2, window_bounds = array<i64: 128, 128>}, {pipeline_mode = #tpu.pipeline_mode<synchronous>, transform_indices = @transform_3, window_bounds = array<i64: 1, 128>}, {pipeline_mode = #tpu.pipeline_mode<synchronous>, transform_indices = @transform_4, window_bounds = array<i64: 128, 128>}, {pipeline_mode = #tpu.pipeline_mode<synchronous>, transform_indices = @transform_5, window_bounds = array<i64: 256, 128>}, {pipeline_mode = #tpu.pipeline_mode<synchronous>, transform_indices = @transform_6, window_bounds = array<i64: 1, 128>}, {transform_indices = @transform_7, window_bounds = array<i64: 8, 128>}, {transform_indices = @transform_8, window_bounds = array<i64: 8, 128>}]} {
    %c0 = arith.constant 0 : index
    %c0_0 = arith.constant 0 : index
    %0 = vector.load %arg1[%c0, %c0_0] : memref<8x128xf32, #tpu.memory_space<vmem>>, vector<8x128xf32>
    %1 = arith.truncf %0 : vector<8x128xf32> to vector<8x128xbf16>
    %c0_1 = arith.constant 0 : index
    %c0_2 = arith.constant 0 : index
    %2 = vector.load %arg2[%c0_1, %c0_2] : memref<128x128xbf16, #tpu.memory_space<vmem>>, vector<128x128xbf16>
    %cst = arith.constant dense<0.000000e+00> : vector<8x128xf32>
    %3 = tpu.matmul %1, %2, %cst {dimension_numbers = #tpu.dot_dimension_numbers<[1], [0], [0], [1], [0, 0, 1, 1], [], []>} : vector<8x128xbf16>, vector<128x128xbf16>, vector<8x128xf32> -> vector<8x128xf32>
    %c0_3 = arith.constant 0 : index
    %c0_4 = arith.constant 0 : index
    %4 = vector.load %arg4[%c0_3, %c0_4] : memref<1x128xf32, #tpu.memory_space<vmem>>, vector<1x128xf32>
    %5 = vector.broadcast %4 : vector<1x128xf32> to vector<8x128xf32>
    %6 = arith.addf %3, %5 : vector<8x128xf32>
    %7 = arith.mulf %0, %0 : vector<8x128xf32>
    %8 = arith.truncf %7 : vector<8x128xf32> to vector<8x128xbf16>
    %c0_5 = arith.constant 0 : index
    %c0_6 = arith.constant 0 : index
    %9 = vector.load %arg3[%c0_5, %c0_6] : memref<128x128xbf16, #tpu.memory_space<vmem>>, vector<128x128xbf16>
    %cst_7 = arith.constant dense<0.000000e+00> : vector<8x128xf32>
    %10 = tpu.matmul %8, %9, %cst_7 {dimension_numbers = #tpu.dot_dimension_numbers<[1], [0], [0], [1], [0, 0, 1, 1], [], []>} : vector<8x128xbf16>, vector<128x128xbf16>, vector<8x128xf32> -> vector<8x128xf32>
    %cst_8 = arith.constant 1.000000e+02 : f32
    %11 = vector.broadcast %cst_8 : f32 to vector<8x128xf32>
    %12 = arith.mulf %11, %6 : vector<8x128xf32>
    %13 = arith.negf %12 : vector<8x128xf32>
    %14 = math.exp %13 : vector<8x128xf32>
    %cst_9 = arith.constant 1.000000e+00 : f32
    %15 = vector.broadcast %cst_9 : f32 to vector<8x128xf32>
    %16 = arith.addf %15, %14 : vector<8x128xf32>
    %17 = arith.divf %15, %16 : vector<8x128xf32>
    %18 = arith.mulf %17, %6 : vector<8x128xf32>
    %19 = arith.mulf %17, %10 : vector<8x128xf32>
    %cst_10 = arith.constant 1.000000e+00 : f32
    %20 = vector.broadcast %cst_10 : f32 to vector<8x128xf32>
    %21 = arith.subf %20, %17 : vector<8x128xf32>
    %22 = arith.mulf %17, %21 : vector<8x128xf32>
    %23 = arith.mulf %6, %6 : vector<8x128xf32>
    %24 = arith.mulf %22, %23 : vector<8x128xf32>
    %25 = arith.addf %19, %24 : vector<8x128xf32>
    %26 = arith.mulf %18, %18 : vector<8x128xf32>
    %27 = arith.addf %25, %26 : vector<8x128xf32>
    %28 = arith.truncf %18 : vector<8x128xf32> to vector<8x128xbf16>
    %c0_11 = arith.constant 0 : index
    %c0_12 = arith.constant 0 : index
    %29 = vector.load %arg5[%c0_11, %c0_12] : memref<128x128xbf16, #tpu.memory_space<vmem>>, vector<128x128xbf16>
    %cst_13 = arith.constant dense<0.000000e+00> : vector<8x128xf32>
    %30 = tpu.matmul %28, %29, %cst_13 {dimension_numbers = #tpu.dot_dimension_numbers<[1], [0], [0], [1], [0, 0, 1, 1], [], []>} : vector<8x128xbf16>, vector<128x128xbf16>, vector<8x128xf32> -> vector<8x128xf32>
    %c0_14 = arith.constant 0 : index
    %c0_15 = arith.constant 0 : index
    %31 = vector.load %arg7[%c0_14, %c0_15] : memref<1x128xf32, #tpu.memory_space<vmem>>, vector<1x128xf32>
    %32 = vector.broadcast %31 : vector<1x128xf32> to vector<8x128xf32>
    %33 = arith.addf %30, %32 : vector<8x128xf32>
    %34 = arith.truncf %27 : vector<8x128xf32> to vector<8x128xbf16>
    %35 = arith.truncf %25 : vector<8x128xf32> to vector<8x128xbf16>
    %36 = tpu.concatenate %34, %35 in 1 : vector<8x128xbf16>, vector<8x128xbf16> -> vector<8x256xbf16>
    %c0_16 = arith.constant 0 : index
    %c0_17 = arith.constant 0 : index
    %37 = vector.load %arg6[%c0_16, %c0_17] : memref<256x128xbf16, #tpu.memory_space<vmem>>, vector<256x128xbf16>
    %cst_18 = arith.constant dense<0.000000e+00> : vector<8x128xf32>
    %38 = tpu.matmul %36, %37, %cst_18 {dimension_numbers = #tpu.dot_dimension_numbers<[1], [0], [0], [1], [0, 0, 1, 1], [], []>} : vector<8x256xbf16>, vector<256x128xbf16>, vector<8x128xf32> -> vector<8x128xf32>
    %c0_19 = arith.constant 0 : index
    %c0_20 = arith.constant 0 : index
    %39 = vector.load %arg8[%c0_19, %c0_20] : memref<8x128xf32, #tpu.memory_space<vmem>>, vector<8x128xf32>
    tpu.vector_store %arg8[%c0_19, %c0_20], %33 {strides = array<i32>} : memref<8x128xf32, #tpu.memory_space<vmem>>, vector<8x128xf32>,
    %c0_21 = arith.constant 0 : index
    %c0_22 = arith.constant 0 : index
    %40 = vector.load %arg9[%c0_21, %c0_22] : memref<8x128xf32, #tpu.memory_space<vmem>>, vector<8x128xf32>
    tpu.vector_store %arg9[%c0_21, %c0_22], %38 {strides = array<i32>} : memref<8x128xf32, #tpu.memory_space<vmem>>, vector<8x128xf32>,
    return
  }
  func.func @transform_0(%arg0: i32) -> (i32, i32) {
    %c0_i32 = arith.constant 0 : i32
    %c0_i32_0 = arith.constant 0 : i32
    return %arg0, %c0_i32 : i32, i32
  }
  func.func @transform_1(%arg0: i32) -> (i32, i32) {
    %c0_i32 = arith.constant 0 : i32
    %c0_i32_0 = arith.constant 0 : i32
    %c0_i32_1 = arith.constant 0 : i32
    return %c0_i32, %c0_i32_0 : i32, i32
  }
  func.func @transform_2(%arg0: i32) -> (i32, i32) {
    %c0_i32 = arith.constant 0 : i32
    %c0_i32_0 = arith.constant 0 : i32
    %c0_i32_1 = arith.constant 0 : i32
    return %c0_i32, %c0_i32_0 : i32, i32
  }
  func.func @transform_3(%arg0: i32) -> (i32, i32) {
    %c0_i32 = arith.constant 0 : i32
    %c0_i32_0 = arith.constant 0 : i32
    %c0_i32_1 = arith.constant 0 : i32
    return %c0_i32, %c0_i32_0 : i32, i32
  }
  func.func @transform_4(%arg0: i32) -> (i32, i32) {
    %c0_i32 = arith.constant 0 : i32
    %c0_i32_0 = arith.constant 0 : i32
    %c0_i32_1 = arith.constant 0 : i32
    return %c0_i32, %c0_i32_0 : i32, i32
  }
  func.func @transform_5(%arg0: i32) -> (i32, i32) {
    %c0_i32 = arith.constant 0 : i32
    %c0_i32_0 = arith.constant 0 : i32
    %c0_i32_1 = arith.constant 0 : i32
    return %c0_i32, %c0_i32_0 : i32, i32
  }
  func.func @transform_6(%arg0: i32) -> (i32, i32) {
    %c0_i32 = arith.constant 0 : i32
    %c0_i32_0 = arith.constant 0 : i32
    %c0_i32_1 = arith.constant 0 : i32
    return %c0_i32, %c0_i32_0 : i32, i32
  }
  func.func @transform_7(%arg0: i32) -> (i32, i32) {
    %c0_i32 = arith.constant 0 : i32
    %c0_i32_0 = arith.constant 0 : i32
    return %arg0, %c0_i32 : i32, i32
  }
  func.func @transform_8(%arg0: i32) -> (i32, i32) {
    %c0_i32 = arith.constant 0 : i32
    %c0_i32_0 = arith.constant 0 : i32
    return %arg0, %c0_i32 : i32, i32
  }
}

</mosaic_0001>

<bundles_post_ra>
// kernel: vbp_net_forward.1
= control target key start
LH: loop header
LB: loop body
LE: loop exit
PB: predicated region body
PF: predicated region fallthrough
CT: control target
= control target key end

     0   :  { %14 = vsyncpa [#allocation3], 0  ;;  %s926_s0 = inlined_call_operand.vmem [shape: f32[8,128], index: 0, kind: input, shape index: {}]   ;;  %s927_s1 = inlined_call_operand.hbm [shape: bf16[128,128], index: 1, kind: input, shape index: {}]   ;;  %s928_s2 = inlined_call_operand.hbm [shape: bf16[128,128], index: 2, kind: input, shape index: {}]   ;;  %s929_s3 = inlined_call_operand.vmem [shape: f32[1,128], index: 3, kind: input, shape index: {}, may-alias: {3,6}]   ;;  %s930_s4 = inlined_call_operand.hbm [shape: bf16[128,128], index: 4, kind: input, shape index: {}]   ;;  %s931_s5 = inlined_call_operand.hbm [shape: bf16[256,128], index: 5, kind: input, shape index: {}]   ;;  %s932_s6 = inlined_call_operand.vmem [shape: f32[1,128], index: 6, kind: input, shape index: {}, may-alias: {3,6}]   ;;  %s933_s7 = inlined_call_operand.vmem [shape: f32[8,128], index: 7, kind: output, shape index: {0}]   ;;  %s934_s8 = inlined_call_operand.vmem [shape: f32[8,128], index: 8, kind: output, shape index: {1}]  }
   0x1   :  { %15 = vsyncpa [#allocation5], 0 }
   0x2   :  { %16 = vsyncpa [#allocation8], 0  ;;  %s36_s29 = sshll.u32 %s928_s2, 4  ;;  %s848_s30 = smov [#allocation4]   ;;  %s37_s29 = int_to_ptr.hbm [resolvable:$true] %s36_s29 }
   0x3   :  { %s38_s9 = sshll.u32 %s848_s30, 4  ;;  %s23_s12 = sshll.u32 %s927_s1, 4  ;;  %s39_s9 = int_to_ptr.vmem [resolvable:$true] %s38_s9  ;;  %s24_s12 = int_to_ptr.hbm [resolvable:$true] %s23_s12 }
   0x4   :  { %s849_s13 = smov 64   ;;  %s850_s14 = smov 4  }
   0x5   :  { %44 = dma.hbm_to_vmem [thread:$0]  %s37_s29, 1024, %s39_s9, [#allocation5], %s849_s13, %s849_s13, %s850_s14  }
   0x6   :  { %s851_s15 = smov [#allocation2]   ;;  %s51_s19 = sshll.u32 %s930_s4, 4  ;;  %s52_s19 = int_to_ptr.hbm [resolvable:$true] %s51_s19 }
   0x7   :  { %s25_s16 = sshll.u32 %s851_s15, 4  ;;  %s64_s21 = sshll.u32 %s931_s5, 4  ;;  %s26_s16 = int_to_ptr.vmem [resolvable:$true] %s25_s16  ;;  %s65_s21 = int_to_ptr.hbm [resolvable:$true] %s64_s21 }
   0x8   :  { %31 = dma.hbm_to_vmem [thread:$0]  %s24_s12, 1024, %s26_s16, [#allocation3], %s849_s13, %s849_s13, %s850_s14  }
   0x9   :  { %s852_s22 = smov [#allocation6]   ;;  %s853_s1 = smov [#allocation7]  }
   0xa   :  { %s53_s23 = sshll.u32 %s852_s22, 4  ;;  %s66_s24 = sshll.u32 %s853_s1, 4  ;;  %s54_s23 = int_to_ptr.vmem [resolvable:$true] %s53_s23  ;;  %s67_s24 = int_to_ptr.vmem [resolvable:$true] %s66_s24 }
   0xb   :  { %59 = dma.hbm_to_vmem [thread:$0]  %s52_s19, 1024, %s54_s23, [#allocation5], %s849_s13, %s849_s13, %s850_s14  }
   0xc   :  { %72 = dma.hbm_to_vmem [thread:$0]  %s65_s21, 2048, %s67_s24, [#allocation8], %s849_s13, %s849_s13, %s850_s14  }
   0xd   :  { %842 = dma.done.wait [#allocation3], 1024  }
   0xe   :  { %843 = vsyncadd [#allocation3], 4294966272 }
   0xf   :  { %844 = dma.done.wait [#allocation5], 2048  }
  0x10   :  { %845 = vsyncadd [#allocation5], 4294965248 }
  0x11   :  { %846 = dma.done.wait [#allocation8], 2048  }
  0x12   :  { %847 = vsyncadd [#allocation8], 4294965248  ;;  %v701_v0 = vld [vmem:[#allocation2 + $0x38] sm:$0xff]  ;;  %v700_v1 = vld [vmem:[#allocation2 + $0x30] sm:$0xff] }
  0x13   :  { %161 = vmatpush.bf16.msra.mxu0 %v701_v0  ;;  %v709_v2 = vld [vmem:[#allocation4 + $0x38] sm:$0xff]  ;;  %v708_v3 = vld [vmem:[#allocation4 + $0x30] sm:$0xff]  ;;  %v699_v4 = vld [vmem:[#allocation2 + $0x28] sm:$0xff] }
  0x14   :  { %240 = vmatpush.bf16.msra.mxu1 %v709_v2  ;;  %v707_v5 = vld [vmem:[#allocation4 + $0x28] sm:$0xff]  ;;  %v698_v6 = vld [vmem:[#allocation2 + $0x20] sm:$0xff]  ;;  %v697_v8 = vld [vmem:[#allocation2 + $0x18] sm:$0xff] }
  0x15   :  { %v706_v7 = vld [vmem:[#allocation4 + $0x20] sm:$0xff]  ;;  %v705_v9 = vld [vmem:[#allocation4 + $0x18] sm:$0xff]  ;;  %v696_v10 = vld [vmem:[#allocation2 + $0x10] sm:$0xff] }
  0x16   :  { %v704_v11 = vld [vmem:[#allocation4 + $0x10] sm:$0xff]  ;;  %v695_v12 = vld [vmem:[#allocation2 + $0x8] sm:$0xff]  ;;  %v694_v14 = vld [vmem:[#allocation2] sm:$0xff] }
  0x17   :  { %162 = vmatpush.bf16.msra.mxu0 %v700_v1  ;;  %v703_v13 = vld [vmem:[#allocation4 + $0x8] sm:$0xff]  ;;  %v91_v15 = vld [vmem:[%s926_s0] sm:$0xff]  ;;  %v717_v20 = vld [vmem:[#allocation6 + $0x38] sm:$0xff] }
  0x18   :  { %241 = vmatpush.bf16.msra.mxu1 %v708_v3  ;;  %v174_v16 = vmul.f32 %v91_v15, %v91_v15  ;;  %v702_v17 = vld [vmem:[#allocation4] sm:$0xff]  ;;  %v92_v18 = vpack.c.bf16 %v91_v15, %v91_v15  ;;  %351 = vmatpush.bf16.msra.mxu2 %v717_v20  ;;  %v716_v21 = vld [vmem:[#allocation6 + $0x30] sm:$0xff]  ;;  %v733_v22 = vld [vmem:[#allocation7 + $0x78] sm:$0xff] }
  0x19   :  { %v715_v23 = vld [vmem:[#allocation6 + $0x28] sm:$0xff]  ;;  %v725_v24 = vld [vmem:[#allocation7 + $0x38] sm:$0xff]  ;;  %v732_v25 = vld [vmem:[#allocation7 + $0x70] sm:$0xff] }
  0x1a   :  { %v175_v19 = vpack.c.bf16 %v174_v16, %v174_v16  ;;  %494 = vmatpush.bf16.msra.mxu3 %v725_v24  ;;  %v714_v26 = vld [vmem:[#allocation6 + $0x20] sm:$0xff]  ;;  %v724_v27 = vld [vmem:[#allocation7 + $0x30] sm:$0xff]  ;;  %v731_v28 = vld [vmem:[#allocation7 + $0x68] sm:$0xff] }
  0x1b   :  { %163 = vmatpush.bf16.msra.mxu0 %v699_v4  ;;  %v713_v29 = vld [vmem:[#allocation6 + $0x18] sm:$0xff]  ;;  %v723_v30 = vld [vmem:[#allocation7 + $0x28] sm:$0xff]  ;;  %v730_v31 = vld [vmem:[#allocation7 + $0x60] sm:$0xff] }
  0x1c   :  { %242 = vmatpush.bf16.msra.mxu1 %v707_v5  ;;  %352 = vmatpush.bf16.msra.mxu2 %v716_v21  ;;  %v712_v32 = vld [vmem:[#allocation6 + $0x10] sm:$0xff]  ;;  %v722_v33 = vld [vmem:[#allocation7 + $0x20] sm:$0xff]  ;;  %v729_v34 = vld [vmem:[#allocation7 + $0x58] sm:$0xff] }
  0x1d   :  { %v711_v35 = vld [vmem:[#allocation6 + $0x8] sm:$0xff]  ;;  %v721_v36 = vld [vmem:[#allocation7 + $0x18] sm:$0xff]  ;;  %v740_v37 = vld [vmem:[%s929_s3] ss:$0 sm:$0xff] }
  0x1e   :  { %495 = vmatpush.bf16.msra.mxu3 %v724_v27  ;;  %v728_v38 = vld [vmem:[#allocation7 + $0x50] sm:$0xff]  ;;  %v710_v40 = vld [vmem:[#allocation6] sm:$0xff]  ;;  %v727_v44 = vld [vmem:[#allocation7 + $0x48] sm:$0xff] }
  0x1f   :  { %164 = vmatpush.bf16.msra.mxu0 %v698_v6  ;;  %v720_v41 = vld [vmem:[#allocation7 + $0x10] sm:$0xff]  ;;  %v719_v46 = vld [vmem:[#allocation7 + $0x8] sm:$0xff]  ;;  %v726_v48 = vld [vmem:[#allocation7 + $0x40] sm:$0xff] }
  0x20   :  { %243 = vmatpush.bf16.msra.mxu1 %v706_v7  ;;  %353 = vmatpush.bf16.msra.mxu2 %v715_v23  ;;  %v718_v49 = vld [vmem:[#allocation7] sm:$0xff] }
  0x22   :  { %496 = vmatpush.bf16.msra.mxu3 %v723_v30 }
  0x23   :  { %165 = vmatpush.bf16.msra.mxu0 %v697_v8 }
  0x24   :  { %244 = vmatpush.bf16.msra.mxu1 %v705_v9  ;;  %354 = vmatpush.bf16.msra.mxu2 %v714_v26 }
  0x26   :  { %497 = vmatpush.bf16.msra.mxu3 %v722_v33 }
  0x27   :  { %166 = vmatpush.bf16.msra.mxu0 %v696_v10 }
  0x28   :  { %245 = vmatpush.bf16.msra.mxu1 %v704_v11  ;;  %355 = vmatpush.bf16.msra.mxu2 %v713_v29 }
  0x2a   :  { %498 = vmatpush.bf16.msra.mxu3 %v721_v36 }
  0x2b   :  { %167 = vmatpush.bf16.msra.mxu0 %v695_v12  ;;  %v741_v12 = vld [vmem:[%s932_s6] ss:$0 sm:$0xff] }
  0x2c   :  { %246 = vmatpush.bf16.msra.mxu1 %v703_v13  ;;  %356 = vmatpush.bf16.msra.mxu2 %v712_v32 }
  0x2e   :  { %499 = vmatpush.bf16.msra.mxu3 %v720_v41 }
  0x2f   :  { %168 = vmatpush.bf16.msra.mxu0 %v694_v14 }
  0x30   :  { %247 = vmatpush.bf16.msra.mxu1 %v702_v17  ;;  %357 = vmatpush.bf16.msra.mxu2 %v711_v35 }
  0x32   :  { %169 = vmatmul.bf16.vlgmr.msra.gmra.mxu0 %v92_v18  ;;  %500 = vmatpush.bf16.msra.mxu3 %v719_v46 }
  0x33   :  { %248 = vmatmul.bf16.vlgmr.msra.gmra.mxu1 %v175_v19  ;;  %507 = vmatpush.bf16.msrb.mxu0 %v733_v22 }
  0x34   :  { %358 = vmatpush.bf16.msra.mxu2 %v710_v40 }
  0x36   :  { %501 = vmatpush.bf16.msra.mxu3 %v718_v49 }
  0x37   :  { %508 = vmatpush.bf16.msrb.mxu0 %v732_v25 }
  0x3b   :  { %509 = vmatpush.bf16.msrb.mxu0 %v731_v28 }
  0x3f   :  { %510 = vmatpush.bf16.msrb.mxu0 %v730_v31 }
  0x43   :  { %511 = vmatpush.bf16.msrb.mxu0 %v729_v34 }
  0x47   :  { %512 = vmatpush.bf16.msrb.mxu0 %v728_v38 }
  0x4b   :  { %513 = vmatpush.bf16.msrb.mxu0 %v727_v44 }
  0x4f   :  { %514 = vmatpush.bf16.msrb.mxu0 %v726_v48 }
  0xaf   :  { %v170_v39 = vpop.f32.mrf.mxu0 }
  0xb0   :  { %v171_v42 = vadd.f32 %v740_v37, %v170_v39  ;;  %v249_v43 = vpop.f32.mrf.mxu1 }
  0xb2   :  { %v597_v45 = vmul.f32 -100.0, %v171_v42  ;;  %v277_v2 = vmul.f32 %v171_v42, %v171_v42 }
  0xb4   :  { %v255_v47 = vmul.f32 1.442695, %v597_v45 }
  0xb6   :  { %742 = vpow2.f32 %v255_v47 }
  0xb7   :  { %v172_v50 = vpop.f32.mrf.mxu0 }
  0xb8   :  { %v251_v51 = vpop.f32.mrf.mxu1 }
  0xbc   :  { %v743_v52 = vpop.eup %742 }
  0xbd   :  { %v257_v53 = vadd.f32 1.0, %v743_v52 }
  0xbf   :  { %744 = vrcp.f32 %v257_v53  ;;  %v269_v57 = vand.u32 2147483648, %v257_v53  ;;  %v267_v59 = vand.u32 2147483647, %v257_v53  ;;  %vm263_vm1 = vweird.f32 %v257_v53 }
  0xc1   :  { %v270_v61 = vor.u32 1.1754944e-38, %v269_v57  ;;  %vm268_vm3 = vcmp.eq.f32.partialorder %v267_v59, 8.507059e+37 }
  0xc5   :  { %v745_v54 = vpop.eup %744 }
  0xc6   :  { %v259_v55 = vmul.f32 %v745_v54, %v257_v53  ;;  %vm264_vm0 = vweird.f32 %v745_v54 }
  0xc7   :  { %vm265_vm2 = vmor %vm263_vm1, %vm264_vm0 }
  0xc8   :  { %v260_v56 = vsub.f32 1.0, %v259_v55 }
  0xca   :  { %v261_v58 = vmul.f32 %v745_v54, %v260_v56 }
  0xcc   :  { %v262_v60 = vadd.f32 %v745_v54, %v261_v58 }
  0xce   :  { %v266_v62 = vsel %vm265_vm2, %v745_v54, %v262_v60 }
  0xcf   :  { %v271_v63 = vsel %vm268_vm3, %v270_v61, %v266_v62 }
  0xd0   :  { %v275_v0 = vsub.f32 1.0, %v271_v63  ;;  %v273_v1 = vmul.f32 %v271_v63, %v171_v42  ;;  %v274_v5 = vmul.f32 %v271_v63, %v249_v43 }
  0xd2   :  { %v276_v3 = vmul.f32 %v275_v0, %v271_v63  ;;  %v282_v4 = vpack.c.bf16 %v273_v1, %v273_v1  ;;  %v280_v8 = vmul.f32 %v273_v1, %v273_v1 }
  0xd4   :  { %v278_v6 = vmul.f32 %v277_v2, %v276_v3  ;;  %359 = vmatmul.bf16.vlgmr.msra.gmra.mxu2 %v282_v4 }
  0xd6   :  { %v279_v7 = vadd.f32 %v278_v6, %v274_v5 }
  0xd8   :  { %v365_v9 = vpack.c.bf16 %v279_v7, %v279_v7  ;;  %v281_v10 = vadd.f32 %v280_v8, %v279_v7 }
  0xda   :  { %515 = vmatmul.bf16.vlgmr.msrb.gmra.mxu0 %v365_v9  ;;  %v364_v11 = vpack.c.bf16 %v281_v10, %v281_v10 }
  0xdc   :  { %502 = vmatmul.bf16.vlgmr.msra.gmra.mxu3 %v364_v11 }
 0x157   :  { %v360_v13 = vpop.f32.mrf.mxu2  ;;  %v516_v14 = vpop.f32.mrf.mxu0 }
 0x158   :  { %v361_v15 = vadd.f32 %v741_v12, %v360_v13 }
 0x15a   :  { %520 = vst [vmem:[%s933_s7] sm:$0xff] %v361_v15 }
 0x15f   :  { %v362_v16 = vpop.f32.mrf.mxu2  ;;  %v503_v17 = vpop.f32.mrf.mxu3 }
 0x160   :  { %v517_v18 = vadd.f32 %v516_v14, %v503_v17  ;;  %v518_v19 = vpop.f32.mrf.mxu0 }
 0x162   :  { %521 = vst [vmem:[%s934_s8] sm:$0xff] %v517_v18 }
 0x167   :  { %v505_v20 = vpop.f32.mrf.mxu3 }
 0x168   :  { %530 = vsyncpa [#allocation3], 1 }
 0x169   :  { %531 = vsyncpa [#allocation5], 1 }
 0x16a   :  { %532 = vsyncpa [#allocation8], 1 }

</bundles_post_ra>
